<compile_context>
chip_gen: v6e
topology: v6e:2x2x1
jax: 0.10.0
libtpu: 0.0.40
codegen_flags: <defaults>
</compile_context>

<pallas_src>
import jax
import jax.numpy as jnp
from jax.experimental import pallas as pl
from jax.experimental.pallas import tpu as pltpu


def _round_up(n, m):
    return ((n + m - 1) // m) * m


def _num_tensorcores():
    """Best-effort TensorCore count (v7x=2, v5e/v6e=1). Defaults to 1."""
    try:
        info = pltpu.get_tpu_info()
    except Exception:
        return 1
    for attr in ("num_cores", "core_count", "tensorcore_count", "num_tensorcores"):
        v = getattr(info, attr, None)
        try:
            if v is not None and int(v) > 0:
                return int(v)
        except (TypeError, ValueError):
            pass
    return 1


_NUM_TC = _num_tensorcores()


def dqn_kernel(x_ref, w1_ref, b1_ref, w2_ref, b2_ref, w3_ref, b3_ref, o_ref):
    # x is f32 in VMEM; cast to bf16 in-kernel (cheap VPU work hidden under
    # the dots). Weights are bf16, biases f32. All dots accumulate f32 on the
    # MXU; bias add / ReLU stay f32 and are re-narrowed to bf16 only as the
    # LHS of the next dot.
    x = x_ref[...].astype(jnp.bfloat16)                               # bf16 [T, in]
    h1 = jnp.dot(x, w1_ref[...], preferred_element_type=jnp.float32)  # f32 [T, 128]
    h1 = jnp.maximum(h1 + b1_ref[...], 0.0)
    h2 = jnp.dot(h1.astype(jnp.bfloat16), w2_ref[...],
                 preferred_element_type=jnp.float32)                  # f32 [T, 128]
    h2 = jnp.maximum(h2 + b2_ref[...], 0.0)
    out = jnp.dot(h2.astype(jnp.bfloat16), w3_ref[...],
                  preferred_element_type=jnp.float32) + b3_ref[...]   # f32 [T, 128pad]
    # Store only the real output columns -> narrow HBM writeback, no wrapper slice.
    o_ref[...] = out[:, : o_ref.shape[-1]].astype(o_ref.dtype)


def prepare_dqn_params(params):
    """One-time param prep (do NOT call per forward): bf16 weights, f32 biases,
    w3/b3 zero-padded to a 128-lane multiple so the last dot stays lane-dense."""
    output_dim = params["w3"].shape[1]
    out_pad = _round_up(max(output_dim, 128), 128)
    w3 = jnp.pad(params["w3"], ((0, 0), (0, out_pad - output_dim)))
    b3 = jnp.pad(params["b3"], ((0, 0), (0, out_pad - output_dim)))
    return {
        "w1": params["w1"].astype(jnp.bfloat16),
        "b1": params["b1"].astype(jnp.float32),
        "w2": params["w2"].astype(jnp.bfloat16),
        "b2": params["b2"].astype(jnp.float32),
        "w3": w3.astype(jnp.bfloat16),
        "b3": b3.astype(jnp.float32),
        "output_dim": int(output_dim),  # python int, used for out_shape
    }


def dqn_forward(x, prepped, *, batch_tile=1024):
    """x: [B, input_dim] float32. prepped: output of prepare_dqn_params.

    Returns [B, output_dim] float32.
    """
    B, input_dim = x.shape
    hidden = prepped["w1"].shape[1]
    out_pad = prepped["w3"].shape[1]
    output_dim = prepped["output_dim"]

    # --- adaptive batch tile ---------------------------------------------------
    tile = min(batch_tile, _round_up(B, 8))
    # Only split a single-tile grid when there really are 2 TensorCores (v7x)
    # and each half is big enough to amortize per-core fixed cost.
    if _NUM_TC >= 2 and _round_up(B, tile) // tile < 2 and tile >= 512:
        tile = _round_up(tile // 2, 8)
    Bp = _round_up(B, tile)
    if Bp != B:
        # Cold path: only ragged batches pay this extra copy of x.
        x = jnp.pad(x, ((0, Bp - B), (0, 0)))
    grid = (Bp // tile,)

    def const_spec(shape):
        # Constant index_map -> weight block stays resident across batch tiles.
        return pl.BlockSpec(shape, lambda i: (0, 0))

    flops = 2 * Bp * (input_dim * hidden + hidden * hidden + hidden * out_pad)
    bytes_accessed = (
        Bp * input_dim * 4                                               # x (f32)
        + (input_dim * hidden + hidden * hidden + hidden * out_pad) * 2  # bf16 weights
        + (2 * hidden + out_pad) * 4                                     # f32 biases
        + Bp * output_dim * 4                                            # narrow f32 out
    )

    out = pl.pallas_call(
        dqn_kernel,
        out_shape=jax.ShapeDtypeStruct((Bp, output_dim), jnp.float32),
        grid=grid,
        in_specs=[
            pl.BlockSpec((tile, input_dim), lambda i: (i, 0)),  # x tile (f32)
            const_spec((input_dim, hidden)),                    # w1 (bf16)
            const_spec((1, hidden)),                            # b1 (f32)
            const_spec((hidden, hidden)),                       # w2 (bf16)
            const_spec((1, hidden)),                            # b2 (f32)
            const_spec((hidden, out_pad)),                      # w3 (bf16, padded)
            const_spec((1, out_pad)),                           # b3 (f32, padded)
        ],
        out_specs=pl.BlockSpec((tile, output_dim), lambda i: (i, 0)),
        compiler_params=pltpu.CompilerParams(
            dimension_semantics=("parallel",),
        ),
        cost_estimate=pl.CostEstimate(
            flops=flops, bytes_accessed=bytes_accessed, transcendentals=0),
    )(x, prepped["w1"], prepped["b1"], prepped["w2"], prepped["b2"],
      prepped["w3"], prepped["b3"])

    return out[:B] if Bp != B else out


def init_dqn_params(key, input_dim, output_dim, hidden=128):
    """Synthetic init mimicking nn.Linear's U(-1/sqrt(fan_in), 1/sqrt(fan_in)).

    Weights are stored pre-transposed as [in_features, out_features] so the
    kernel computes x @ W + b directly on the MXU.
    """
    ks = jax.random.split(key, 6)

    def linear(kw, kb, fan_in, fan_out):
        bound = 1.0 / jnp.sqrt(fan_in)
        w = jax.random.uniform(kw, (fan_in, fan_out), jnp.float32, -bound, bound)
        b = jax.random.uniform(kb, (1, fan_out), jnp.float32, -bound, bound)
        return w, b

    w1, b1 = linear(ks[0], ks[1], input_dim, hidden)
    w2, b2 = linear(ks[2], ks[3], hidden, hidden)
    w3, b3 = linear(ks[4], ks[5], hidden, output_dim)
    return {"w1": w1, "b1": b1, "w2": w2, "b2": b2, "w3": w3, "b3": b3}


def dqn_reference(x, p):
    """Pure-JAX reference with the same bf16-input / f32-accumulate precision."""
    def bf(a):
        return a.astype(jnp.bfloat16).astype(jnp.float32)

    h1 = jnp.maximum(bf(x) @ bf(p["w1"]) + p["b1"], 0.0)
    h2 = jnp.maximum(bf(h1) @ bf(p["w2"]) + p["b2"], 0.0)
    return bf(h2) @ bf(p["w3"]) + p["b3"]


if __name__ == "__main__":
    key = jax.random.PRNGKey(0)
    k_x, k_p = jax.random.split(key)

    batch, input_dim, output_dim = 64, 32, 8
    x = jax.random.normal(k_x, (batch, input_dim), dtype=jnp.float32)
    params = init_dqn_params(k_p, input_dim, output_dim)

    # One-time param prep (cached outside the hot loop in a real DQN trainer).
    prepped = prepare_dqn_params(params)

    out = dqn_forward(x, prepped)
    out = jax.block_until_ready(out)

    ref = dqn_reference(x, params)
    assert out.shape == (batch, output_dim)
    # bf16 matmul inputs -> relaxed tolerance vs the f32-emulated reference.
    assert jnp.allclose(out, ref, atol=2e-2, rtol=2e-2), "mismatch vs reference"

    print("KERNEL_OK")
</pallas_src>

<mosaic_0001>
module attributes {stable_mosaic.version = 11 : i64} {
  func.func @dqn_kernel(%arg0: i32, %arg1: memref<64x32xf32, #tpu.memory_space<vmem>>, %arg2: memref<32x128xbf16, #tpu.memory_space<vmem>>, %arg3: memref<1x128xf32, #tpu.memory_space<vmem>>, %arg4: memref<128x128xbf16, #tpu.memory_space<vmem>>, %arg5: memref<1x128xf32, #tpu.memory_space<vmem>>, %arg6: memref<128x128xbf16, #tpu.memory_space<vmem>>, %arg7: memref<1x128xf32, #tpu.memory_space<vmem>>, %arg8: memref<64x8xf32, #tpu.memory_space<vmem>>) attributes {dimension_semantics = [#tpu.dimension_semantics<parallel>], iteration_bounds = array<i64: 1>, scalar_prefetch = 0 : i64, scratch_operands = 0 : i64, tpu.core_type = #tpu.core_type<tc>, window_params = [{transform_indices = @transform_0, window_bounds = array<i64: 64, 32>}, {pipeline_mode = #tpu.pipeline_mode<synchronous>, transform_indices = @transform_1, window_bounds = array<i64: 32, 128>}, {pipeline_mode = #tpu.pipeline_mode<synchronous>, transform_indices = @transform_2, window_bounds = array<i64: 1, 128>}, {pipeline_mode = #tpu.pipeline_mode<synchronous>, transform_indices = @transform_3, window_bounds = array<i64: 128, 128>}, {pipeline_mode = #tpu.pipeline_mode<synchronous>, transform_indices = @transform_4, window_bounds = array<i64: 1, 128>}, {pipeline_mode = #tpu.pipeline_mode<synchronous>, transform_indices = @transform_5, window_bounds = array<i64: 128, 128>}, {pipeline_mode = #tpu.pipeline_mode<synchronous>, transform_indices = @transform_6, window_bounds = array<i64: 1, 128>}, {transform_indices = @transform_7, window_bounds = array<i64: 64, 8>}]} {
    %c0 = arith.constant 0 : index
    %c0_0 = arith.constant 0 : index
    %0 = vector.load %arg1[%c0, %c0_0] : memref<64x32xf32, #tpu.memory_space<vmem>>, vector<64x32xf32>
    %1 = arith.truncf %0 : vector<64x32xf32> to vector<64x32xbf16>
    %c0_1 = arith.constant 0 : index
    %c0_2 = arith.constant 0 : index
    %2 = vector.load %arg2[%c0_1, %c0_2] : memref<32x128xbf16, #tpu.memory_space<vmem>>, vector<32x128xbf16>
    %cst = arith.constant dense<0.000000e+00> : vector<64x128xf32>
    %3 = tpu.matmul %1, %2, %cst {dimension_numbers = #tpu.dot_dimension_numbers<[1], [0], [0], [1], [0, 0, 1, 1], [], []>} : vector<64x32xbf16>, vector<32x128xbf16>, vector<64x128xf32> -> vector<64x128xf32>
    %c0_3 = arith.constant 0 : index
    %c0_4 = arith.constant 0 : index
    %4 = vector.load %arg3[%c0_3, %c0_4] : memref<1x128xf32, #tpu.memory_space<vmem>>, vector<1x128xf32>
    %5 = vector.broadcast %4 : vector<1x128xf32> to vector<64x128xf32>
    %6 = arith.addf %3, %5 : vector<64x128xf32>
    %cst_5 = arith.constant 0.000000e+00 : f32
    %7 = vector.broadcast %cst_5 : f32 to vector<64x128xf32>
    %8 = arith.maximumf %6, %7 : vector<64x128xf32>
    %9 = arith.truncf %8 : vector<64x128xf32> to vector<64x128xbf16>
    %c0_6 = arith.constant 0 : index
    %c0_7 = arith.constant 0 : index
    %10 = vector.load %arg4[%c0_6, %c0_7] : memref<128x128xbf16, #tpu.memory_space<vmem>>, vector<128x128xbf16>
    %cst_8 = arith.constant dense<0.000000e+00> : vector<64x128xf32>
    %11 = tpu.matmul %9, %10, %cst_8 {dimension_numbers = #tpu.dot_dimension_numbers<[1], [0], [0], [1], [0, 0, 1, 1], [], []>} : vector<64x128xbf16>, vector<128x128xbf16>, vector<64x128xf32> -> vector<64x128xf32>
    %c0_9 = arith.constant 0 : index
    %c0_10 = arith.constant 0 : index
    %12 = vector.load %arg5[%c0_9, %c0_10] : memref<1x128xf32, #tpu.memory_space<vmem>>, vector<1x128xf32>
    %13 = vector.broadcast %12 : vector<1x128xf32> to vector<64x128xf32>
    %14 = arith.addf %11, %13 : vector<64x128xf32>
    %cst_11 = arith.constant 0.000000e+00 : f32
    %15 = vector.broadcast %cst_11 : f32 to vector<64x128xf32>
    %16 = arith.maximumf %14, %15 : vector<64x128xf32>
    %17 = arith.truncf %16 : vector<64x128xf32> to vector<64x128xbf16>
    %c0_12 = arith.constant 0 : index
    %c0_13 = arith.constant 0 : index
    %18 = vector.load %arg6[%c0_12, %c0_13] : memref<128x128xbf16, #tpu.memory_space<vmem>>, vector<128x128xbf16>
    %cst_14 = arith.constant dense<0.000000e+00> : vector<64x128xf32>
    %19 = tpu.matmul %17, %18, %cst_14 {dimension_numbers = #tpu.dot_dimension_numbers<[1], [0], [0], [1], [0, 0, 1, 1], [], []>} : vector<64x128xbf16>, vector<128x128xbf16>, vector<64x128xf32> -> vector<64x128xf32>
    %c0_15 = arith.constant 0 : index
    %c0_16 = arith.constant 0 : index
    %20 = vector.load %arg7[%c0_15, %c0_16] : memref<1x128xf32, #tpu.memory_space<vmem>>, vector<1x128xf32>
    %21 = vector.broadcast %20 : vector<1x128xf32> to vector<64x128xf32>
    %22 = arith.addf %19, %21 : vector<64x128xf32>
    %23 = vector.extract_strided_slice %22 {offsets = [0, 0], sizes = [64, 8], strides = [1, 1]} : vector<64x128xf32> to vector<64x8xf32>
    %c0_17 = arith.constant 0 : index
    %c0_18 = arith.constant 0 : index
    %24 = vector.load %arg8[%c0_17, %c0_18] : memref<64x8xf32, #tpu.memory_space<vmem>>, vector<64x8xf32>
    tpu.vector_store %arg8[%c0_17, %c0_18], %23 {strides = array<i32>} : memref<64x8xf32, #tpu.memory_space<vmem>>, vector<64x8xf32>,
    return
  }
  func.func @transform_0(%arg0: i32) -> (i32, i32) {
    %c0_i32 = arith.constant 0 : i32
    %c0_i32_0 = arith.constant 0 : i32
    return %arg0, %c0_i32 : i32, i32
  }
  func.func @transform_1(%arg0: i32) -> (i32, i32) {
    %c0_i32 = arith.constant 0 : i32
    %c0_i32_0 = arith.constant 0 : i32
    %c0_i32_1 = arith.constant 0 : i32
    return %c0_i32, %c0_i32_0 : i32, i32
  }
  func.func @transform_2(%arg0: i32) -> (i32, i32) {
    %c0_i32 = arith.constant 0 : i32
    %c0_i32_0 = arith.constant 0 : i32
    %c0_i32_1 = arith.constant 0 : i32
    return %c0_i32, %c0_i32_0 : i32, i32
  }
  func.func @transform_3(%arg0: i32) -> (i32, i32) {
    %c0_i32 = arith.constant 0 : i32
    %c0_i32_0 = arith.constant 0 : i32
    %c0_i32_1 = arith.constant 0 : i32
    return %c0_i32, %c0_i32_0 : i32, i32
  }
  func.func @transform_4(%arg0: i32) -> (i32, i32) {
    %c0_i32 = arith.constant 0 : i32
    %c0_i32_0 = arith.constant 0 : i32
    %c0_i32_1 = arith.constant 0 : i32
    return %c0_i32, %c0_i32_0 : i32, i32
  }
  func.func @transform_5(%arg0: i32) -> (i32, i32) {
    %c0_i32 = arith.constant 0 : i32
    %c0_i32_0 = arith.constant 0 : i32
    %c0_i32_1 = arith.constant 0 : i32
    return %c0_i32, %c0_i32_0 : i32, i32
  }
  func.func @transform_6(%arg0: i32) -> (i32, i32) {
    %c0_i32 = arith.constant 0 : i32
    %c0_i32_0 = arith.constant 0 : i32
    %c0_i32_1 = arith.constant 0 : i32
    return %c0_i32, %c0_i32_0 : i32, i32
  }
  func.func @transform_7(%arg0: i32) -> (i32, i32) {
    %c0_i32 = arith.constant 0 : i32
    %c0_i32_0 = arith.constant 0 : i32
    return %arg0, %c0_i32 : i32, i32
  }
}

</mosaic_0001>

<bundles_post_ra>
// kernel: tpu_custom_call.1
= control target key start
LH: loop header
LB: loop body
LE: loop exit
PB: predicated region body
PF: predicated region fallthrough
CT: control target
= control target key end

     0   :  { %12 = vsyncpa [#allocation3], 0  ;;  %s622_s24 = smov [#allocation2]   ;;  %s767_s0 = inlined_call_operand.vmem [shape: f32[64,32], index: 0, kind: input, shape index: {}]   ;;  %s768_s1 = inlined_call_operand.vmem [shape: bf16[32,128], index: 1, kind: input, shape index: {}]   ;;  %s769_s2 = inlined_call_operand.vmem [shape: f32[1,128], index: 2, kind: input, shape index: {}]   ;;  %s770_s3 = inlined_call_operand.vmem [shape: bf16[128,128], index: 3, kind: input, shape index: {}]   ;;  %s771_s4 = inlined_call_operand.vmem [shape: f32[1,128], index: 4, kind: input, shape index: {}]   ;;  %s772_s5 = inlined_call_operand.hbm [shape: bf16[128,128], index: 5, kind: input, shape index: {}]   ;;  %s773_s6 = inlined_call_operand.vmem [shape: f32[1,128], index: 6, kind: input, shape index: {}]   ;;  %s774_s7 = inlined_call_operand.vmem [shape: f32[64,8], index: 7, kind: output, shape index: {}]  }
   0x1   :  { %s28_s25 = sshll.u32 %s622_s24, 4  ;;  %s29_s25 = int_to_ptr.vmem [resolvable:$true] %s28_s25 }
   0x2   :  { %s608_s26 = scalar_lea.vmem %s29_s25, 1024  ;;  %p613_p1 = scmp.lt.s32.totalorder %s29_s25, %s29_s25 }
   0x3   :  { %p609_p0 = scmp.ne.s32.totalorder %s29_s25, %s608_s26  ;;  %p614_p2 = scmp.lt.s32.totalorder %s608_s26, %s608_s26 }
   0x5   :  { %p615_p3 = por %p614_p2, %p613_p1 }
   0x7   :  { %p616_p4 = pnand %p615_p3, %p609_p0 }
   0x9   :  { %619 = shalt.err (!%p616_p4)
}
   0xa   :  { %s623_s27 = smov 64   ;;  %s624_s28 = smov 4  }
   0xb   :  { %34 = dma.hbm_to_vmem [thread:$0]  %s772_s5, 1024, %s29_s25, [#allocation3], %s623_s27, %s623_s27, %s624_s28  }
   0xc   :  { %620 = dma.done.wait [#allocation3], 1024  }
   0xd   :  { %621 = vsyncadd [#allocation3], 4294966272  ;;  %v582_v0 = vld [vmem:[%s768_s1 + $0x8] sm:$0xff]   ;;  %v583_v1 = vld [vmem:[%s768_s1] sm:$0xff]   ;;  %vm76_vm0 = vcmask 261120   ;;  %vm450_vm1 = vcmask 64512  }
   0xe   :  { %519 = vmatprep.subr.bf16.mxu0 %v582_v0  ;;  %v41_v2 = vld [vmem:[%s767_s0] sm:$0xff]  ;;  %v42_v3 = vld [vmem:[%s767_s0 + $0x8] sm:$0xff]  ;;  %v43_v5 = vld [vmem:[%s767_s0 + $0x10] sm:$0xff] }
   0xf   :  { %520 = vmatpush3.bf16.msra.mxu0 %v582_v0  ;;  %v49_v4 = vpack.c.bf16 %v42_v3, %v41_v2  ;;  %v44_v6 = vld [vmem:[%s767_s0 + $0x18] sm:$0xff]  ;;  %v45_v7 = vld [vmem:[%s767_s0 + $0x20] sm:$0xff]  ;;  %v46_v8 = vld [vmem:[%s767_s0 + $0x28] sm:$0xff] }
  0x10   :  { %521 = vmatprep.subr.bf16.mxu0 %v583_v1  ;;  %v584_v9 = vld [vmem:[%s770_s3 + $0x38] sm:$0xff]   ;;  %v50_v10 = vpack.c.bf16 %v44_v6, %v43_v5  ;;  %v585_v11 = vld [vmem:[%s770_s3 + $0x30] sm:$0xff]   ;;  %v51_v12 = vpack.c.bf16 %v46_v8, %v45_v7  ;;  %v586_v15 = vld [vmem:[%s770_s3 + $0x28] sm:$0xff]  }
  0x11   :  { %523 = vmatprep.mubr.msk.bf16.mxu0 %vm76_vm0, %v49_v4  ;;  %531 = vmatprep.subr.bf16.mxu1 %v584_v9  ;;  %v47_v13 = vld [vmem:[%s767_s0 + $0x30] sm:$0xff]  ;;  %v48_v14 = vld [vmem:[%s767_s0 + $0x38] sm:$0xff]  ;;  %v587_v16 = vld [vmem:[%s770_s3 + $0x20] sm:$0xff]  }
  0x12   :  { %532 = vmatpush3.bf16.msra.mxu1 %v584_v9  ;;  %v52_v17 = vpack.c.bf16 %v48_v14, %v47_v13  ;;  %v588_v18 = vld [vmem:[%s770_s3 + $0x18] sm:$0xff]   ;;  %v589_v19 = vld [vmem:[%s770_s3 + $0x10] sm:$0xff]   ;;  %v590_v20 = vld [vmem:[%s770_s3 + $0x8] sm:$0xff]  }
  0x13   :  { %522 = vmatpush3.bf16.msra.mxu0 %v583_v1  ;;  %533 = vmatprep.subr.bf16.mxu1 %v585_v11  ;;  %v591_v21 = vld [vmem:[%s770_s3] sm:$0xff]   ;;  %v592_v22 = vld [vmem:[#allocation2 + $0x38] sm:$0xff]   ;;  %v593_v23 = vld [vmem:[#allocation2 + $0x30] sm:$0xff]  }
  0x14   :  { %555 = vmatprep.subr.bf16.mxu0 %v592_v22  ;;  %v594_v24 = vld [vmem:[#allocation2 + $0x28] sm:$0xff]   ;;  %v595_v25 = vld [vmem:[#allocation2 + $0x20] sm:$0xff]   ;;  %v596_v26 = vld [vmem:[#allocation2 + $0x18] sm:$0xff]  }
  0x15   :  { %v464_v29 = vld [vmem:[%s769_s2] ss:$0 sm:$0xff]  ;;  %v597_v56 = vld [vmem:[#allocation2 + $0x10] sm:$0xff]   ;;  %v598_v57 = vld [vmem:[#allocation2 + $0x8] sm:$0xff]  }
  0x16   :  { %524 = vmatmul.mubr.msk.bf16.vlgmr.msra.gmra.mxu0 %vm76_vm0, %v50_v10  ;;  %534 = vmatpush3.bf16.msra.mxu1 %v585_v11  ;;  %v599_v58 = vld [vmem:[#allocation2] sm:$0xff]  }
  0x17   :  { %527 = vmatprep.mubr.msk.bf16.mxu0 %vm76_vm0, %v51_v12  ;;  %535 = vmatprep.subr.bf16.mxu1 %v586_v15  ;;  %v471_v61 = vld [vmem:[%s771_s4] ss:$0 sm:$0xff] }
  0x18   :  { %556 = vmatpush3.bf16.msra.mxu0 %v592_v22 }
  0x19   :  { %557 = vmatprep.subr.bf16.mxu0 %v593_v23 }
  0x1a   :  { %536 = vmatpush3.bf16.msra.mxu1 %v586_v15 }
  0x1b   :  { %537 = vmatprep.subr.bf16.mxu1 %v587_v16 }
  0x1c   :  { %558 = vmatpush3.bf16.msra.mxu0 %v593_v23 }
  0x1d   :  { %559 = vmatprep.subr.bf16.mxu0 %v594_v24 }
  0x1e   :  { %528 = vmatmul.mubr.msk.bf16.gmra.mxu0 %vm76_vm0, %v52_v17  ;;  %538 = vmatpush3.bf16.msra.mxu1 %v587_v16 }
  0x1f   :  { %539 = vmatprep.subr.bf16.mxu1 %v588_v18 }
  0x20   :  { %560 = vmatpush3.bf16.msra.mxu0 %v594_v24  ;;  %v480_v24 = vld [vmem:[%s773_s6] ss:$0 sm:$0xff] }
  0x21   :  { %561 = vmatprep.subr.bf16.mxu0 %v595_v25 }
  0x22   :  { %540 = vmatpush3.bf16.msra.mxu1 %v588_v18 }
  0x23   :  { %541 = vmatprep.subr.bf16.mxu1 %v589_v19 }
  0x24   :  { %562 = vmatpush3.bf16.msra.mxu0 %v595_v25 }
  0x25   :  { %563 = vmatprep.subr.bf16.mxu0 %v596_v26 }
  0x26   :  { %542 = vmatpush3.bf16.msra.mxu1 %v589_v19 }
  0x27   :  { %543 = vmatprep.subr.bf16.mxu1 %v590_v20 }
  0x28   :  { %564 = vmatpush3.bf16.msra.mxu0 %v596_v26 }
  0x29   :  { %565 = vmatprep.subr.bf16.mxu0 %v597_v56 }
  0x2a   :  { %544 = vmatpush3.bf16.msra.mxu1 %v590_v20 }
  0x2b   :  { %545 = vmatprep.subr.bf16.mxu1 %v591_v21 }
  0x2c   :  { %566 = vmatpush3.bf16.msra.mxu0 %v597_v56 }
  0x2d   :  { %567 = vmatprep.subr.bf16.mxu0 %v598_v57 }
  0x2e   :  { %546 = vmatpush3.bf16.msra.mxu1 %v591_v21 }
  0x30   :  { %568 = vmatpush3.bf16.msra.mxu0 %v598_v57 }
  0x31   :  { %569 = vmatprep.subr.bf16.mxu0 %v599_v58 }
  0x34   :  { %570 = vmatpush3.bf16.msra.mxu0 %v599_v58 }
  0xd6   :  { %v525_v27 = vpop.f32.mrf.mxu0 }
  0xd7   :  { %v132_v33 = vadd.f32 %v525_v27, %v464_v29 }
  0xd8   :  { %v123_v28 = vpop.f32.mrf.mxu0 }
  0xd9   :  { %v124_v31 = vadd.f32 %v464_v29, %v123_v28  ;;  %v156_v40 = vmax.f32 %v132_v33, 0.0 }
  0xda   :  { %v526_v30 = vpop.f32.mrf.mxu0 }
  0xdb   :  { %v135_v32 = vadd.f32 %v526_v30, %v464_v29  ;;  %v154_v38 = vmax.f32 %v124_v31, 0.0 }
  0xdc   :  { %v126_v34 = vpop.f32.mrf.mxu0 }
  0xdd   :  { %v127_v35 = vadd.f32 %v464_v29, %v126_v34  ;;  %v157_v36 = vmax.f32 %v135_v32, 0.0 }
  0xde   :  { %v529_v37 = vpop.f32.mrf.mxu0 }
  0xdf   :  { %v155_v39 = vmax.f32 %v127_v35, 0.0  ;;  %v163_v43 = vpack.c.bf16 %v157_v36, %v156_v40  ;;  %v148_v47 = vadd.f32 %v529_v37, %v464_v29 }
  0xe0   :  { %v139_v41 = vpop.f32.mrf.mxu0 }
  0xe1   :  { %v162_v42 = vpack.c.bf16 %v155_v39, %v154_v38  ;;  %v140_v45 = vadd.f32 %v464_v29, %v139_v41  ;;  %v160_v53 = vmax.f32 %v148_v47, 0.0 }
  0xe2   :  { %v530_v44 = vpop.f32.mrf.mxu0 }
  0xe3   :  { %v151_v46 = vadd.f32 %v530_v44, %v464_v29  ;;  %547 = vmatprep.mubr.bf16.mxu1 %v162_v42  ;;  %v158_v51 = vmax.f32 %v140_v45, 0.0 }
  0xe4   :  { %v142_v48 = vpop.f32.mrf.mxu0  ;;  %548 = vmatmul.mubr.bf16.vlgmr.msra.gmra.mxu1 %v163_v43 }
  0xe5   :  { %v143_v49 = vadd.f32 %v464_v29, %v142_v48  ;;  %v161_v50 = vmax.f32 %v151_v46, 0.0 }
  0xe7   :  { %v159_v52 = vmax.f32 %v143_v49, 0.0  ;;  %v165_v55 = vpack.c.bf16 %v161_v50, %v160_v53 }
  0xe9   :  { %v164_v54 = vpack.c.bf16 %v159_v52, %v158_v51 }
  0xeb   :  { %551 = vmatprep.mubr.bf16.mxu1 %v164_v54 }
  0xec   :  { %552 = vmatmul.mubr.bf16.gmra.mxu1 %v165_v55 }
 0x1a4   :  { %v549_v59 = vpop.f32.mrf.mxu1 }
 0x1a5   :  { %v280_v1 = vadd.f32 %v549_v59, %v471_v61 }
 0x1a6   :  { %v271_v60 = vpop.f32.mrf.mxu1 }
 0x1a7   :  { %v272_v63 = vadd.f32 %v471_v61, %v271_v60  ;;  %v304_v8 = vmax.f32 %v280_v1, 0.0 }
 0x1a8   :  { %v550_v62 = vpop.f32.mrf.mxu1 }
 0x1a9   :  { %v283_v0 = vadd.f32 %v550_v62, %v471_v61  ;;  %v302_v6 = vmax.f32 %v272_v63, 0.0 }
 0x1aa   :  { %v274_v2 = vpop.f32.mrf.mxu1 }
 0x1ab   :  { %v275_v3 = vadd.f32 %v471_v61, %v274_v2  ;;  %v305_v4 = vmax.f32 %v283_v0, 0.0 }
 0x1ac   :  { %v553_v5 = vpop.f32.mrf.mxu1 }
 0x1ad   :  { %v303_v7 = vmax.f32 %v275_v3, 0.0  ;;  %v311_v11 = vpack.c.bf16 %v305_v4, %v304_v8  ;;  %v296_v15 = vadd.f32 %v553_v5, %v471_v61 }
 0x1ae   :  { %v287_v9 = vpop.f32.mrf.mxu1 }
 0x1af   :  { %v310_v10 = vpack.c.bf16 %v303_v7, %v302_v6  ;;  %v288_v13 = vadd.f32 %v471_v61, %v287_v9  ;;  %v308_v21 = vmax.f32 %v296_v15, 0.0 }
 0x1b0   :  { %v554_v12 = vpop.f32.mrf.mxu1 }
 0x1b1   :  { %v299_v14 = vadd.f32 %v554_v12, %v471_v61  ;;  %571 = vmatprep.mubr.bf16.mxu0 %v310_v10  ;;  %v306_v19 = vmax.f32 %v288_v13, 0.0 }
 0x1b2   :  { %v290_v16 = vpop.f32.mrf.mxu1  ;;  %572 = vmatmul.mubr.bf16.vlgmr.msra.gmra.mxu0 %v311_v11 }
 0x1b3   :  { %v291_v17 = vadd.f32 %v471_v61, %v290_v16  ;;  %v309_v18 = vmax.f32 %v299_v14, 0.0 }
 0x1b5   :  { %v307_v20 = vmax.f32 %v291_v17, 0.0  ;;  %v313_v23 = vpack.c.bf16 %v309_v18, %v308_v21 }
 0x1b7   :  { %v312_v22 = vpack.c.bf16 %v307_v20, %v306_v19 }
 0x1b9   :  { %575 = vmatprep.mubr.bf16.mxu0 %v312_v22 }
 0x1ba   :  { %576 = vmatmul.mubr.bf16.gmra.mxu0 %v313_v23 }
 0x272   :  { %v573_v25 = vpop.f32.mrf.mxu0 }
 0x273   :  { %v428_v26 = vadd.f32 %v573_v25, %v480_v24 }
 0x274   :  { %v419_v27 = vpop.f32.mrf.mxu0 }
 0x275   :  { %453 = vst.msk [vmem:[%s774_s7 + $0x10] sm:$0xff] %vm450_vm1, %v428_v26  ;;  %v420_v28 = vadd.f32 %v480_v24, %v419_v27 }
 0x276   :  { %v574_v29 = vpop.f32.mrf.mxu0 }
 0x277   :  { %451 = vst.msk [vmem:[%s774_s7] sm:$0xff] %vm450_vm1, %v420_v28  ;;  %v431_v30 = vadd.f32 %v574_v29, %v480_v24 }
 0x278   :  { %v422_v31 = vpop.f32.mrf.mxu0 }
 0x279   :  { %454 = vst.msk [vmem:[%s774_s7 + $0x18] sm:$0xff] %vm450_vm1, %v431_v30  ;;  %v423_v32 = vadd.f32 %v480_v24, %v422_v31 }
 0x27a   :  { %v577_v33 = vpop.f32.mrf.mxu0 }
 0x27b   :  { %452 = vst.msk [vmem:[%s774_s7 + $0x8] sm:$0xff] %vm450_vm1, %v423_v32  ;;  %v444_v34 = vadd.f32 %v577_v33, %v480_v24 }
 0x27c   :  { %v435_v35 = vpop.f32.mrf.mxu0 }
 0x27d   :  { %457 = vst.msk [vmem:[%s774_s7 + $0x30] sm:$0xff] %vm450_vm1, %v444_v34  ;;  %v436_v36 = vadd.f32 %v480_v24, %v435_v35 }
 0x27e   :  { %v578_v37 = vpop.f32.mrf.mxu0 }
 0x27f   :  { %455 = vst.msk [vmem:[%s774_s7 + $0x20] sm:$0xff] %vm450_vm1, %v436_v36  ;;  %v447_v38 = vadd.f32 %v578_v37, %v480_v24 }
 0x280   :  { %v438_v39 = vpop.f32.mrf.mxu0 }
 0x281   :  { %458 = vst.msk [vmem:[%s774_s7 + $0x38] sm:$0xff] %vm450_vm1, %v447_v38  ;;  %v439_v40 = vadd.f32 %v480_v24, %v438_v39 }
 0x283   :  { %456 = vst.msk [vmem:[%s774_s7 + $0x28] sm:$0xff] %vm450_vm1, %v439_v40 }
 0x284   :  { %463 = vsyncpa [#allocation3], 1 }

</bundles_post_ra>
